<compile_context>
chip_gen: v6e
topology: v6e:2x2x1
jax: 0.10.0
libtpu: 0.0.40
codegen_flags: <defaults>
</compile_context>

<pallas_src>
import jax
import jax.numpy as jnp
from jax.experimental import pallas as pl
from jax.experimental.pallas import tpu as pltpu

_C_IN = 128     # classifier input features
_C_OUT = 50     # classifier output features
# TB*TT row cap: 8192 rows x 128 lanes x 4 B = 4 MiB per x block
# (8 MiB double-buffered) -> safe under every generation's default scoped VMEM.
_MAX_BLOCK_ROWS = 8192


def _noise_tail_kernel(x_ref, w_ref, b_ref, o_ref, acc_ref):
    # x_ref:   (TB, TT, 128)  input tile, channels lane-major, native dtype
    # w_ref:   (128, 50)      weight^T pre-scaled by 1/T, f32
    # b_ref:   (1, 50)        bias, f32
    # o_ref:   (TB, 50)       output tile (same block across the T grid axis)
    # acc_ref: (TB, 128) f32  running channel-sum over the temporal grid axis
    t = pl.program_id(1)

    @pl.when(t == 0)
    def _init():
        acc_ref[...] = jnp.zeros_like(acc_ref)

    # Sublane (temporal) reduction; upcast after the (possibly bf16) load.
    acc_ref[...] += jnp.sum(x_ref[...].astype(jnp.float32), axis=1)

    @pl.when(t == pl.num_programs(1) - 1)
    def _finalize():
        # 1/T is folded into w_ref, so acc @ w == mean(x, dim=2) @ W^T.
        y = jnp.dot(acc_ref[...], w_ref[...],
                    preferred_element_type=jnp.float32)
        o_ref[...] = (y + b_ref[...]).astype(o_ref.dtype)


def _pick_tile(dim, cap):
    """Largest multiple-of-8 divisor of `dim` that is <= cap; `dim` itself if
    it already fits or no such divisor exists (full extent is always legal)."""
    if dim <= cap:
        return dim
    best = None
    d = 8
    while d <= cap:
        if dim % d == 0:
            best = d
        d += 8
    return best if best is not None else dim


def _pick_tiles(batch, t_len, max_rows):
    tt = _pick_tile(t_len, max_rows)
    tb = _pick_tile(batch, max(1, max_rows // tt))
    return tb, tt


def prepare_params(weight, bias, t_len, dtype=jnp.float32):
    """One-time parameter prep (hoisted out of the per-call path):
    PyTorch weight (50,128) -> (128,50) with the 1/T mean scale folded in."""
    w_t = (weight.T * (1.0 / t_len)).astype(dtype)          # (128, 50)
    b2 = bias.reshape(1, _C_OUT).astype(dtype)               # (1, 50)
    return w_t, b2


def noise_tail_forward(x, w_t_scaled, b2, *, max_block_rows=_MAX_BLOCK_ROWS):
    """x: (B, 128, T) PyTorch NCL layout (f32 or bf16).
    w_t_scaled, b2: from prepare_params.  Returns (B, 50) f32 ((50,) if B==1)."""
    B, C, T = x.shape
    assert C == _C_IN, "NoiseTail.classifier expects 128 input features"

    # Lane-major channels for the kernel (channel-last layout).
    # TODO(synk): accept channel-last input directly to skip this HBM pass
    # when the upstream producer can emit (B, T, 128).
    x_btc = jnp.transpose(x, (0, 2, 1))                       # (B, T, 128)

    tb, tt = _pick_tiles(B, T, max_block_rows)
    grid = (B // tb, T // tt)

    out = pl.pallas_call(
        _noise_tail_kernel,
        out_shape=jax.ShapeDtypeStruct((B, _C_OUT), jnp.float32),
        grid_spec=pltpu.PrefetchScalarGridSpec(
            num_scalar_prefetch=0,
            grid=grid,
            in_specs=[
                pl.BlockSpec((tb, tt, _C_IN), lambda i, t: (i, t, 0)),
                pl.BlockSpec((_C_IN, _C_OUT), lambda i, t: (0, 0)),
                pl.BlockSpec((1, _C_OUT), lambda i, t: (0, 0)),
            ],
            out_specs=pl.BlockSpec((tb, _C_OUT), lambda i, t: (i, 0)),
            scratch_shapes=[pltpu.VMEM((tb, _C_IN), jnp.float32)],
        ),
        compiler_params=pltpu.CompilerParams(
            dimension_semantics=("parallel", "arbitrary")),
    )(x_btc, w_t_scaled, b2)

    # torch .squeeze(): only changes shape when B == 1
    if B == 1:
        out = out.reshape(_C_OUT)
    return out


def _reference(x, weight, bias):
    m = jnp.mean(x.astype(jnp.float32), axis=2)
    y = m @ weight.T.astype(jnp.float32) + bias.astype(jnp.float32)
    return y.reshape(_C_OUT) if x.shape[0] == 1 else y


def _check(key, B, T, max_block_rows, tol=1e-4):
    kx, kw, kb = jax.random.split(key, 3)
    x = jax.random.normal(kx, (B, _C_IN, T), dtype=jnp.float32)
    bound = 1.0 / float(jnp.sqrt(float(_C_IN)))
    weight = jax.random.uniform(kw, (_C_OUT, _C_IN), minval=-bound,
                                maxval=bound, dtype=jnp.float32)
    bias = jax.random.uniform(kb, (_C_OUT,), minval=-bound, maxval=bound,
                              dtype=jnp.float32)

    w_t, b2 = prepare_params(weight, bias, T)
    out = jax.block_until_ready(
        noise_tail_forward(x, w_t, b2, max_block_rows=max_block_rows))
    ref = _reference(x, weight, bias)

    expected_shape = (_C_OUT,) if B == 1 else (B, _C_OUT)
    assert out.shape == expected_shape, (out.shape, expected_shape)
    err = jnp.max(jnp.abs(out - ref))
    assert jnp.allclose(out, ref, atol=tol, rtol=tol), f"max err {err}"


if __name__ == "__main__":
    key = jax.random.PRNGKey(0)
    k1, k2, k3 = jax.random.split(key, 3)

    # Base case matching the module: B=2, C=128, T=8 (single grid step).
    _check(k1, B=2, T=8, max_block_rows=_MAX_BLOCK_ROWS)
    # Exercise the temporal accumulator path (grid split over T).
    _check(k2, B=4, T=256, max_block_rows=64)
    # Exercise batch-parallel tiling (grid split over B, "parallel" axis).
    _check(k3, B=16, T=16, max_block_rows=128)

    print("KERNEL_OK")
</pallas_src>

<mosaic_0001>
module attributes {stable_mosaic.version = 11 : i64} {
  func.func @_noise_tail_kernel(%arg0: i32, %arg1: i32, %arg2: memref<2x8x128xf32, #tpu.memory_space<vmem>>, %arg3: memref<128x50xf32, #tpu.memory_space<vmem>>, %arg4: memref<1x50xf32, #tpu.memory_space<vmem>>, %arg5: memref<2x50xf32, #tpu.memory_space<vmem>>, %arg6: memref<2x128xf32, #tpu.memory_space<vmem>>) attributes {dimension_semantics = [#tpu.dimension_semantics<parallel>, #tpu.dimension_semantics<arbitrary>], iteration_bounds = array<i64: 1, 1>, scalar_prefetch = 0 : i64, scratch_operands = 1 : i64, tpu.core_type = #tpu.core_type<tc>, window_params = [{transform_indices = @transform_0, window_bounds = array<i64: 2, 8, 128>}, {pipeline_mode = #tpu.pipeline_mode<synchronous>, transform_indices = @transform_1, window_bounds = array<i64: 128, 50>}, {pipeline_mode = #tpu.pipeline_mode<synchronous>, transform_indices = @transform_2, window_bounds = array<i64: 1, 50>}, {transform_indices = @transform_3, window_bounds = array<i64: 2, 50>}]} {
    %c0_i32 = arith.constant 0 : i32
    %0 = arith.cmpi eq, %arg1, %c0_i32 : i32
    %1 = arith.extui %0 : i1 to i32
    %c0_i32_0 = arith.constant 0 : i32
    %2 = arith.cmpi ne, %1, %c0_i32_0 : i32
    scf.if %2 {
      %cst_9 = arith.constant 0.000000e+00 : f32
      %11 = vector.broadcast %cst_9 : f32 to vector<2x128xf32>
      %c0_10 = arith.constant 0 : index
      %c0_11 = arith.constant 0 : index
      %12 = vector.load %arg6[%c0_10, %c0_11] : memref<2x128xf32, #tpu.memory_space<vmem>>, vector<2x128xf32>
      tpu.vector_store %arg6[%c0_10, %c0_11], %11 {strides = array<i32>} : memref<2x128xf32, #tpu.memory_space<vmem>>, vector<2x128xf32>,
    } else {
    }
    %c0 = arith.constant 0 : index
    %c0_1 = arith.constant 0 : index
    %3 = vector.load %arg6[%c0, %c0_1] : memref<2x128xf32, #tpu.memory_space<vmem>>, vector<2x128xf32>
    %c0_2 = arith.constant 0 : index
    %c0_3 = arith.constant 0 : index
    %c0_4 = arith.constant 0 : index
    %4 = vector.load %arg2[%c0_2, %c0_3, %c0_4] : memref<2x8x128xf32, #tpu.memory_space<vmem>>, vector<2x8x128xf32>
    %cst = arith.constant dense<0.000000e+00> : vector<2x128xf32>
    %5 = vector.multi_reduction <add>, %4, %cst [1] : vector<2x8x128xf32> to vector<2x128xf32>
    %6 = arith.addf %3, %5 : vector<2x128xf32>
    %c0_5 = arith.constant 0 : index
    %c0_6 = arith.constant 0 : index
    %7 = vector.load %arg6[%c0_5, %c0_6] : memref<2x128xf32, #tpu.memory_space<vmem>>, vector<2x128xf32>
    tpu.vector_store %arg6[%c0_5, %c0_6], %6 {strides = array<i32>} : memref<2x128xf32, #tpu.memory_space<vmem>>, vector<2x128xf32>,
    %c0_i32_7 = arith.constant 0 : i32
    %8 = arith.cmpi eq, %arg1, %c0_i32_7 : i32
    %9 = arith.extui %8 : i1 to i32
    %c0_i32_8 = arith.constant 0 : i32
    %10 = arith.cmpi ne, %9, %c0_i32_8 : i32
    scf.if %10 {
      %c0_9 = arith.constant 0 : index
      %c0_10 = arith.constant 0 : index
      %11 = vector.load %arg6[%c0_9, %c0_10] : memref<2x128xf32, #tpu.memory_space<vmem>>, vector<2x128xf32>
      %c0_11 = arith.constant 0 : index
      %c0_12 = arith.constant 0 : index
      %12 = vector.load %arg3[%c0_11, %c0_12] : memref<128x50xf32, #tpu.memory_space<vmem>>, vector<128x50xf32>
      %cst_13 = arith.constant dense<0.000000e+00> : vector<2x50xf32>
      %13 = tpu.matmul %11, %12, %cst_13 {dimension_numbers = #tpu.dot_dimension_numbers<[1], [0], [0], [1], [0, 0, 1, 1], [], []>} : vector<2x128xf32>, vector<128x50xf32>, vector<2x50xf32> -> vector<2x50xf32>
      %c0_14 = arith.constant 0 : index
      %c0_15 = arith.constant 0 : index
      %14 = vector.load %arg4[%c0_14, %c0_15] : memref<1x50xf32, #tpu.memory_space<vmem>>, vector<1x50xf32>
      %15 = vector.broadcast %14 : vector<1x50xf32> to vector<2x50xf32>
      %16 = arith.addf %13, %15 : vector<2x50xf32>
      %c0_16 = arith.constant 0 : index
      %c0_17 = arith.constant 0 : index
      %17 = vector.load %arg5[%c0_16, %c0_17] : memref<2x50xf32, #tpu.memory_space<vmem>>, vector<2x50xf32>
      tpu.vector_store %arg5[%c0_16, %c0_17], %16 {strides = array<i32>} : memref<2x50xf32, #tpu.memory_space<vmem>>, vector<2x50xf32>,
    } else {
    }
    return
  }
  func.func @transform_0(%arg0: i32, %arg1: i32) -> (i32, i32, i32) {
    %c0_i32 = arith.constant 0 : i32
    %c0_i32_0 = arith.constant 0 : i32
    return %arg0, %arg1, %c0_i32 : i32, i32, i32
  }
  func.func @transform_1(%arg0: i32, %arg1: i32) -> (i32, i32) {
    %c0_i32 = arith.constant 0 : i32
    %c0_i32_0 = arith.constant 0 : i32
    %c0_i32_1 = arith.constant 0 : i32
    return %c0_i32, %c0_i32_0 : i32, i32
  }
  func.func @transform_2(%arg0: i32, %arg1: i32) -> (i32, i32) {
    %c0_i32 = arith.constant 0 : i32
    %c0_i32_0 = arith.constant 0 : i32
    %c0_i32_1 = arith.constant 0 : i32
    return %c0_i32, %c0_i32_0 : i32, i32
  }
  func.func @transform_3(%arg0: i32, %arg1: i32) -> (i32, i32) {
    %c0_i32 = arith.constant 0 : i32
    %c0_i32_0 = arith.constant 0 : i32
    return %arg0, %c0_i32 : i32, i32
  }
}

</mosaic_0001>

<bundles_post_ra>
// kernel: tpu_custom_call.1
= control target key start
LH: loop header
LB: loop body
LE: loop exit
PB: predicated region body
PF: predicated region fallthrough
CT: control target
= control target key end

     0   :  { %v233_v1 = vmov 0.0   ;;  %vm234_vm0 = vmmov 0   ;;  %s334_s0 = inlined_call_operand.vmem [shape: f32[2,8,128], index: 0, kind: input, shape index: {}]   ;;  %s335_s1 = inlined_call_operand.vmem [shape: f32[128,50], index: 1, kind: input, shape index: {}]   ;;  %s336_s2 = inlined_call_operand.vmem [shape: f32[1,50], index: 2, kind: input, shape index: {}]   ;;  %s337_s3 = inlined_call_operand.hbm [shape: f32[2,50], index: 3, kind: output, shape index: {}]  }
   0x1   :  { %v61_v0 = vld [vmem:[%s335_s1 + $0x78] sm:$0xff]  ;;  %173 = vmatprep.subr.mxu0 %v233_v1  ;;  %19 = vst [vmem:[#allocation2] sm:$0x3] %v233_v1  ;;  %v60_v2 = vld [vmem:[%s335_s1 + $0x70] sm:$0xff]  ;;  %205 = vmatprep.mubr.msk.f32.mxu0 %vm234_vm0, %v233_v1  ;;  %v59_v3 = vld [vmem:[%s335_s1 + $0x68] sm:$0xff] }
   0x2   :  { %174 = vmatpush3.msra.mxu0 %v61_v0  ;;  %v58_v4 = vld [vmem:[%s335_s1 + $0x60] sm:$0xff]  ;;  %v22_v6 = vld [vmem:[%s334_s0 + $0x8] sm:$0xff] }
   0x3   :  { %175 = vmatprep.subr.mxu0 %v233_v1  ;;  %v21_v5 = vld [vmem:[%s334_s0] sm:$0xff]  ;;  %v29_v8 = vrot.slane %v22_v6, 4 }
   0x4   :  { %176 = vmatpush3.msra.mxu0 %v60_v2  ;;  %v23_v7 = vrot.slane %v21_v5, 4 }
   0x5   :  { %177 = vmatprep.subr.mxu0 %v233_v1 }
   0x6   :  { %178 = vmatpush3.msra.mxu0 %v59_v3 }
   0x7   :  { %8 = vsyncpa [#allocation4], 0  ;;  %179 = vmatprep.subr.mxu0 %v233_v1  ;;  %v57_v9 = vld [vmem:[%s335_s1 + $0x58] sm:$0xff]  ;;  %v24_v10 = vadd.f32 %v23_v7, %v21_v5  ;;  %v30_v11 = vadd.f32 %v29_v8, %v22_v6  ;;  %v56_v12 = vld [vmem:[%s335_s1 + $0x50] sm:$0xff]  ;;  %vm37_vm1 = vcmask 1041409   ;;  %s235_s22 = smov [#allocation3]  }
   0x8   :  { %180 = vmatpush3.msra.mxu0 %v58_v4  ;;  %v55_v15 = vld [vmem:[%s335_s1 + $0x48] sm:$0xff]  ;;  %v54_v18 = vld [vmem:[%s335_s1 + $0x40] sm:$0xff]  ;;  %v53_v21 = vld [vmem:[%s335_s1 + $0x38] sm:$0xff]  ;;  %s147_s23 = sshll.u32 %s235_s22, 4  ;;  %vm139_vm2 = vcmask 402432   ;;  %s148_s23 = int_to_ptr.vmem [resolvable:$true] %s147_s23 }
   0x9   :  { %181 = vmatprep.subr.mxu0 %v233_v1  ;;  %v25_v13 = vrot.slane %v24_v10, 2  ;;  %v31_v14 = vrot.slane %v30_v11, 2  ;;  %v20_v22 = vld [vmem:[#allocation2] sm:$0x3]  ;;  %v52_v25 = vld [vmem:[%s335_s1 + $0x30] sm:$0xff]  ;;  %v51_v27 = vld [vmem:[%s335_s1 + $0x28] sm:$0xff]  ;;  %p216_p1 = scmp.lt.s32.totalorder %s148_s23, %s148_s23 }
   0xa   :  { %182 = vmatpush3.msra.mxu0 %v57_v9  ;;  %v50_v29 = vld [vmem:[%s335_s1 + $0x20] sm:$0xff]  ;;  %v49_v30 = vld [vmem:[%s335_s1 + $0x18] sm:$0xff]  ;;  %v48_v31 = vld [vmem:[%s335_s1 + $0x10] sm:$0xff]  ;;  %s211_s24 = scalar_lea.vmem %s148_s23, 32 }
   0xb   :  { %183 = vmatprep.subr.mxu0 %v233_v1  ;;  %v26_v16 = vadd.f32 %v25_v13, %v24_v10  ;;  %v32_v17 = vadd.f32 %v31_v14, %v30_v11  ;;  %v47_v32 = vld [vmem:[%s335_s1 + $0x8] sm:$0xff]  ;;  %v46_v33 = vld [vmem:[%s335_s1] sm:$0xff]  ;;  %p212_p0 = scmp.ne.s32.totalorder %s148_s23, %s211_s24  ;;  %p217_p2 = scmp.lt.s32.totalorder %s211_s24, %s211_s24 }
   0xc   :  { %184 = vmatpush3.msra.mxu0 %v56_v12  ;;  %v155_v35 = vld [vmem:[%s336_s2] ss:$0 sm:$0xff] }
   0xd   :  { %185 = vmatprep.subr.mxu0 %v233_v1  ;;  %v27_v19 = vrot.slane %v26_v16, 1  ;;  %v33_v20 = vrot.slane %v32_v17, 1  ;;  %p218_p3 = por %p217_p2, %p216_p1 }
   0xe   :  { %186 = vmatpush3.msra.mxu0 %v55_v15 }
   0xf   :  { %187 = vmatprep.subr.mxu0 %v233_v1  ;;  %v28_v23 = vadd.f32 %v27_v19, %v26_v16  ;;  %v34_v24 = vadd.f32 %v33_v20, %v32_v17  ;;  %p219_p4 = pnand %p218_p3, %p212_p0 }
  0x10   :  { %188 = vmatpush3.msra.mxu0 %v54_v18 }
  0x11   :  { %189 = vmatprep.subr.mxu0 %v233_v1  ;;  %v38_v26 = vsel %vm37_vm1, %v34_v24, %v28_v23 }
  0x12   :  { %190 = vmatpush3.msra.mxu0 %v53_v21  ;;  %v40_v28 = vadd.f32 %v38_v26, %v20_v22 }
  0x13   :  { %191 = vmatprep.subr.mxu0 %v233_v1 }
  0x14   :  { %192 = vmatpush3.msra.mxu0 %v52_v25  ;;  %41 = vst [vmem:[#allocation2] sm:$0x3] %v40_v28 }
  0x15   :  { %193 = vmatprep.subr.mxu0 %v233_v1 }
  0x16   :  { %194 = vmatpush3.msra.mxu0 %v51_v27 }
  0x17   :  { %195 = vmatprep.subr.mxu0 %v233_v1 }
  0x18   :  { %196 = vmatpush3.msra.mxu0 %v50_v29 }
  0x19   :  { %197 = vmatprep.subr.mxu0 %v233_v1 }
  0x1a   :  { %198 = vmatpush3.msra.mxu0 %v49_v30 }
  0x1b   :  { %199 = vmatprep.subr.mxu0 %v233_v1  ;;  %v45_v34 = vld [vmem:[#allocation2] sm:$0x3] }
  0x1c   :  { %200 = vmatpush3.msra.mxu0 %v48_v31 }
  0x1d   :  { %201 = vmatprep.subr.mxu0 %v233_v1 }
  0x1e   :  { %202 = vmatpush3.msra.mxu0 %v47_v32 }
  0x1f   :  { %203 = vmatprep.subr.mxu0 %v233_v1 }
  0x20   :  { %204 = vmatpush3.msra.mxu0 %v46_v33 }
  0x21   :  { %206 = vmatmul.mubr.f32.vlgmr.msra.gmra.mxu0 %v45_v34 }
  0xe1   :  { %v135_v36 = vpop.f32.mrf.mxu0 }
  0xe2   :  { %v136_v37 = vadd.f32 %v155_v35, %v135_v36 }
  0xe3   :  { %v207_v38 = vpop.f32.mrf.mxu0 }
  0xe4   :  { %140 = vst.msk [vmem:[#allocation3] sm:$0x3] %vm139_vm2, %v136_v37 }
  0xe5   :  { %222 = shalt.err (!%p219_p4)
}
  0xe6   :  { %150 = dma.vmem_to_hbm [thread:$0]  %s148_s23, 32, %s337_s3, [#allocation4]  }
  0xe7   :  { %231 = dma.done.wait [#allocation4], 32  }
  0xe8   :  { %232 = vsyncadd [#allocation4], 4294967264 }
  0xe9   :  { %154 = vsyncpa [#allocation4], 1 }

</bundles_post_ra>
